<compile_context>
chip_gen: v5e
topology: v5e:2x2
jax: 0.10.0
libtpu: 0.0.40
codegen_flags: <defaults>
</compile_context>

<pallas_src>
import functools

import jax
import jax.numpy as jnp
from jax.experimental import pallas as pl
from jax.experimental.pallas import tpu as pltpu

_BF16 = jnp.bfloat16


def _vmem_limit_bytes():
    """Generation-aware scoped-VMEM limit: ~3/4 of physical VMEM."""
    try:
        cap = int(pltpu.get_tpu_info().vmem_capacity_bytes)
    except Exception:
        cap = 64 * 1024 * 1024          # conservative (v7x-sized) fallback
    return (cap * 3) // 4


# ------------------------------ in-kernel helpers ------------------------------

def _ln(x, g, b, eps):
    """LayerNorm over the last axis, statistics in f32. x:(T,C), g/b:(1,C)."""
    mu = jnp.mean(x, axis=-1, keepdims=True)
    var = jnp.mean(jnp.square(x - mu), axis=-1, keepdims=True)
    return (x - mu) * jax.lax.rsqrt(var + eps) * g + b


# ------------------------------ Pallas kernels ------------------------------

def _patch_embed_kernel(xp_ref, w_ref, b_ref, pos_ref, o_ref):
    """Fused: kept-patch linear projection (bf16 MXU) + bias + pos-embed add."""
    x = xp_ref[0].astype(_BF16)                                        # (Tk, P)
    o = (jnp.dot(x, w_ref[...], preferred_element_type=jnp.float32)
         + b_ref[...] + pos_ref[0])
    o_ref[0] = o.astype(o_ref.dtype)


def _block_kernel(x_ref, ln1_g_ref, ln1_b_ref, qkv_w_ref, proj_w_ref, proj_b_ref,
                  ln2_g_ref, ln2_b_ref, fc1_w_ref, fc1_b_ref, fc2_w_ref, fc2_b_ref,
                  lnf_g_ref, lnf_b_ref, o_ref, *, num_heads, eps, final_ln):
    """One full transformer block for one batch element (optionally + final LN)."""
    x = x_ref[0]                                                       # (T, C) f32
    T, C = x.shape
    dh = C // num_heads
    scale = dh ** -0.5

    # ------------- attention branch: x = x + proj(attn(LN1(x))) -------------
    h = _ln(x, ln1_g_ref[...], ln1_b_ref[...], eps).astype(_BF16)
    # qkv_bias=False -> no bias add.
    qkv = jnp.dot(h, qkv_w_ref[...], preferred_element_type=jnp.float32)   # (T,3C) f32

    heads = []
    for hh in range(num_heads):                                        # static unroll
        lo = hh * dh
        # scale folded into q (T*dh mults, not T*T)
        qh = (qkv[:, lo:lo + dh] * scale).astype(_BF16)                # (T, dh)
        kh = qkv[:, C + lo:C + lo + dh].astype(_BF16)
        vh = qkv[:, 2 * C + lo:2 * C + lo + dh].astype(_BF16)
        # contraction over dh (no explicit K transpose)
        s = jax.lax.dot_general(qh, kh, (((1,), (1,)), ((), ())),
                                preferred_element_type=jnp.float32)    # (T, T) f32
        s = s - jnp.max(s, axis=-1, keepdims=True)
        p = jnp.exp(s)
        p = p * pl.reciprocal(jnp.sum(p, axis=-1, keepdims=True), approx=True)
        heads.append(jnp.dot(p.astype(_BF16), vh,
                             preferred_element_type=jnp.float32))      # (T, dh)
    # head-merge, then ONE full-K output projection (K = C)
    attn = jnp.concatenate(heads, axis=-1).astype(_BF16)               # (T, C)
    x = x + jnp.dot(attn, proj_w_ref[...],
                    preferred_element_type=jnp.float32) + proj_b_ref[...]

    # ------------- MLP branch: x = x + fc2(gelu(fc1(LN2(x)))) -------------
    h = _ln(x, ln2_g_ref[...], ln2_b_ref[...], eps).astype(_BF16)
    h = jnp.dot(h, fc1_w_ref[...], preferred_element_type=jnp.float32) + fc1_b_ref[...]
    h = jax.nn.gelu(h, approximate=False).astype(_BF16)                # exact erf (nn.GELU)
    h = jnp.dot(h, fc2_w_ref[...], preferred_element_type=jnp.float32) + fc2_b_ref[...]
    y = x + h                                                          # residual fused

    if final_ln:                                                       # fused final LayerNorm
        y = _ln(y, lnf_g_ref[...], lnf_b_ref[...], eps)
    o_ref[0] = y.astype(o_ref.dtype)


# ------------------------------ kernel wrappers ------------------------------

def pallas_patch_embed(patches, w, b, pos):
    """(B, Tk, P) kept patches -> (B, Tk, E) tokens; bias + pos-embed fused."""
    B, Tk, P = patches.shape
    E = w.shape[1]
    cp = pltpu.CompilerParams(dimension_semantics=("parallel",),
                              vmem_limit_bytes=_vmem_limit_bytes())
    return pl.pallas_call(
        _patch_embed_kernel,
        out_shape=jax.ShapeDtypeStruct((B, Tk, E), jnp.float32),
        grid=(B,),
        in_specs=[pl.BlockSpec((1, Tk, P), lambda i: (i, 0, 0)),
                  pl.BlockSpec((P, E), lambda i: (0, 0)),     # weight stays VMEM-resident
                  pl.BlockSpec((1, E), lambda i: (0, 0)),
                  pl.BlockSpec((1, Tk, E), lambda i: (i, 0, 0))],
        out_specs=pl.BlockSpec((1, Tk, E), lambda i: (i, 0, 0)),
        compiler_params=cp,
    )(patches, w, b.reshape(1, E), pos)


def pallas_block(x, p, lnf_g, lnf_b, num_heads, *, final_ln=False, eps=1e-5):
    """One fused transformer block; grid over batch, all weights resident."""
    B, T, C = x.shape
    Hd = p["fc1_w"].shape[1]
    kern = functools.partial(_block_kernel, num_heads=num_heads, eps=eps,
                             final_ln=final_ln)
    row = lambda i: (i, 0, 0)
    w2 = lambda i: (0, 0)
    cp = pltpu.CompilerParams(dimension_semantics=("parallel",),
                              vmem_limit_bytes=_vmem_limit_bytes())
    return pl.pallas_call(
        kern,
        out_shape=jax.ShapeDtypeStruct((B, T, C), x.dtype),
        grid=(B,),
        in_specs=[pl.BlockSpec((1, T, C), row),
                  pl.BlockSpec((1, C), w2), pl.BlockSpec((1, C), w2),      # ln1
                  pl.BlockSpec((C, 3 * C), w2),                            # qkv_w (bf16)
                  pl.BlockSpec((C, C), w2), pl.BlockSpec((1, C), w2),      # proj
                  pl.BlockSpec((1, C), w2), pl.BlockSpec((1, C), w2),      # ln2
                  pl.BlockSpec((C, Hd), w2), pl.BlockSpec((1, Hd), w2),    # fc1
                  pl.BlockSpec((Hd, C), w2), pl.BlockSpec((1, C), w2),     # fc2
                  pl.BlockSpec((1, C), w2), pl.BlockSpec((1, C), w2)],     # final LN
        out_specs=pl.BlockSpec((1, T, C), row),
        compiler_params=cp,
    )(x,
      p["ln1_g"].reshape(1, C), p["ln1_b"].reshape(1, C),
      p["qkv_w"],
      p["proj_w"], p["proj_b"].reshape(1, C),
      p["ln2_g"].reshape(1, C), p["ln2_b"].reshape(1, C),
      p["fc1_w"], p["fc1_b"].reshape(1, Hd),
      p["fc2_w"], p["fc2_b"].reshape(1, C),
      lnf_g.reshape(1, C), lnf_b.reshape(1, C))


# ------------------------------ model pieces ------------------------------

def trunc_normal(key, shape, std=0.02, dtype=jnp.float32):
    # matches torch trunc_normal_(std=0.02) truncated at +/- 2 std
    return (std * jax.random.truncated_normal(key, -2.0, 2.0, shape)).astype(dtype)


def init_params(key, cfg):
    E = cfg["embed_dim"]
    ph, pw, ic = cfg["patch_h"], cfg["patch_w"], cfg["in_chans"]
    hidden = int(E * cfg["mlp_ratio"])
    num_patches = (cfg["spec_h"] // ph) * (cfg["spec_w"] // pw)
    keys = list(jax.random.split(key, 2 + 4 * cfg["depth"]))
    ki = iter(keys)
    params = {
        # matmul weights stored bf16 (MXU-native); biases / LN / pos-embed stay f32
        "embed_w": trunc_normal(next(ki), (ic * ph * pw, E), dtype=_BF16),
        "embed_b": jnp.zeros((E,), jnp.float32),
        "pos_embed": trunc_normal(next(ki), (1, num_patches, E)),
        "norm_g": jnp.ones((E,), jnp.float32),
        "norm_b": jnp.zeros((E,), jnp.float32),
        "blocks": [],
    }
    for _ in range(cfg["depth"]):
        blk = {
            "ln1_g": jnp.ones((E,), jnp.float32), "ln1_b": jnp.zeros((E,), jnp.float32),
            "qkv_w": trunc_normal(next(ki), (E, 3 * E), dtype=_BF16),   # qkv_bias=False
            "proj_w": trunc_normal(next(ki), (E, E), dtype=_BF16),
            "proj_b": jnp.zeros((E,), jnp.float32),
            "ln2_g": jnp.ones((E,), jnp.float32), "ln2_b": jnp.zeros((E,), jnp.float32),
            "fc1_w": trunc_normal(next(ki), (E, hidden), dtype=_BF16),
            "fc1_b": jnp.zeros((hidden,), jnp.float32),
            "fc2_w": trunc_normal(next(ki), (hidden, E), dtype=_BF16),
            "fc2_b": jnp.zeros((E,), jnp.float32),
        }
        params["blocks"].append(blk)
    return params


def get_mask_v2(key, B, T, mask_ratio):
    """Boolean mask (B, T) with exactly int(T*mask_ratio) True per row."""
    n_mask = int(T * mask_ratio)
    noise = jax.random.uniform(key, (B, T))
    ids = jnp.argsort(noise, axis=1)
    mask = jnp.zeros((B, T), dtype=bool)
    rows = jnp.arange(B)[:, None]
    mask = mask.at[rows, ids[:, :n_mask]].set(True)
    return mask


def encoder_forward(params, x_nchw, mask_key, cfg):
    B, nc, H, W = x_nchw.shape
    ph, pw, E = cfg["patch_h"], cfg["patch_w"], cfg["embed_dim"]
    nh, nw = H // ph, W // pw
    T = nh * nw

    # PatchEmbed_v2 unfold into non-overlapping patches (XLA reshape/transpose).
    xp = x_nchw.reshape(B, nc, nh, ph, nw, pw)
    mel_patches = xp.transpose(0, 2, 4, 1, 3, 5).reshape(B, T, nc * ph * pw)

    # Random mask; kept tokens keep their original order (x[~mask].reshape(B,-1,C)).
    mask_index = get_mask_v2(mask_key, B, T, cfg["mask_ratio"])
    n_keep = T - int(T * cfg["mask_ratio"])
    keep_ids = jnp.argsort(mask_index, axis=1, stable=True)[:, :n_keep]

    # Gather BEFORE projection: equivalent (proj + pos-add are per-token), the full
    # (B,T,E) embedding never materializes in HBM and masked tokens are never projected.
    patches_kept = jnp.take_along_axis(mel_patches, keep_ids[:, :, None], axis=1)
    pos_kept = params["pos_embed"][0, :T, :][keep_ids]                 # (B, n_keep, E)
    # TODO(synk): this small gather pair could be folded into the patch-embed kernel
    #             via PrefetchScalarGridSpec + in-kernel jnp.take; kept as XLA gathers.

    # Fused Pallas kernel: linear projection + bias + pos-embed add (kept tokens only).
    x = pallas_patch_embed(patches_kept, params["embed_w"], params["embed_b"], pos_kept)

    depth = len(params["blocks"])
    for i, blk in enumerate(params["blocks"]):
        x = pallas_block(x, blk, params["norm_g"], params["norm_b"],
                         cfg["num_heads"], final_ln=(i == depth - 1))
    return x, mel_patches, mask_index, H, W


# ------------------------------ main ------------------------------

if __name__ == "__main__":
    # Small but lane-dense config (E=128, P=256, hidden=512): last dims >= 128 so
    # stores are unmasked vst's and the MXU sees full lanes (per review, E=32 toy
    # shapes only measure fixed overhead).
    cfg = dict(spec_h=32, spec_w=128, patch_h=16, patch_w=16, in_chans=1,
               embed_dim=128, depth=2, num_heads=4, mlp_ratio=4.0, mask_ratio=0.5)
    B = 2

    key = jax.random.PRNGKey(0)
    k_x, k_params, k_mask = jax.random.split(key, 3)

    params = init_params(k_params, cfg)
    x = jax.random.normal(k_x, (B, cfg["in_chans"], cfg["spec_h"], cfg["spec_w"]),
                          dtype=jnp.float32)

    out, mel_patches, mask_index, h, w = encoder_forward(params, x, k_mask, cfg)
    jax.block_until_ready(out)

    T = (cfg["spec_h"] // cfg["patch_h"]) * (cfg["spec_w"] // cfg["patch_w"])
    n_keep = T - int(T * cfg["mask_ratio"])
    assert out.shape == (B, n_keep, cfg["embed_dim"])
    assert mel_patches.shape == (B, T, cfg["in_chans"] * cfg["patch_h"] * cfg["patch_w"])
    assert mask_index.shape == (B, T)
    assert (h, w) == (cfg["spec_h"], cfg["spec_w"])
    assert bool(jnp.all(jnp.isfinite(out)))
    print("KERNEL_OK")
</pallas_src>

<mosaic_0001>
module attributes {stable_mosaic.version = 11 : i64} {
  func.func @_patch_embed_kernel(%arg0: i32, %arg1: memref<1x8x256xf32, #tpu.memory_space<vmem>>, %arg2: memref<256x128xbf16, #tpu.memory_space<vmem>>, %arg3: memref<1x128xf32, #tpu.memory_space<vmem>>, %arg4: memref<1x8x128xf32, #tpu.memory_space<vmem>>, %arg5: memref<1x8x128xf32, #tpu.memory_space<vmem>>) attributes {dimension_semantics = [#tpu.dimension_semantics<parallel>], iteration_bounds = array<i64: 2>, scalar_prefetch = 0 : i64, scratch_operands = 0 : i64, tpu.core_type = #tpu.core_type<tc>, window_params = [{transform_indices = @transform_0, window_bounds = array<i64: 1, 8, 256>}, {pipeline_mode = #tpu.pipeline_mode<synchronous>, transform_indices = @transform_1, window_bounds = array<i64: 256, 128>}, {pipeline_mode = #tpu.pipeline_mode<synchronous>, transform_indices = @transform_2, window_bounds = array<i64: 1, 128>}, {transform_indices = @transform_3, window_bounds = array<i64: 1, 8, 128>}, {transform_indices = @transform_4, window_bounds = array<i64: 1, 8, 128>}]} {
    %c0 = arith.constant 0 : index
    %c0_0 = arith.constant 0 : index
    %c0_1 = arith.constant 0 : index
    %0 = vector.load %arg1[%c0, %c0_0, %c0_1] : memref<1x8x256xf32, #tpu.memory_space<vmem>>, vector<1x8x256xf32>
    %1 = vector.shape_cast %0 : vector<1x8x256xf32> to vector<8x256xf32>
    %2 = arith.truncf %1 : vector<8x256xf32> to vector<8x256xbf16>
    %c0_2 = arith.constant 0 : index
    %c0_3 = arith.constant 0 : index
    %3 = vector.load %arg2[%c0_2, %c0_3] : memref<256x128xbf16, #tpu.memory_space<vmem>>, vector<256x128xbf16>
    %cst = arith.constant dense<0.000000e+00> : vector<8x128xf32>
    %4 = tpu.matmul %2, %3, %cst {dimension_numbers = #tpu.dot_dimension_numbers<[1], [0], [0], [1], [0, 0, 1, 1], [], []>} : vector<8x256xbf16>, vector<256x128xbf16>, vector<8x128xf32> -> vector<8x128xf32>
    %c0_4 = arith.constant 0 : index
    %c0_5 = arith.constant 0 : index
    %5 = vector.load %arg3[%c0_4, %c0_5] : memref<1x128xf32, #tpu.memory_space<vmem>>, vector<1x128xf32>
    %6 = vector.broadcast %5 : vector<1x128xf32> to vector<8x128xf32>
    %7 = arith.addf %4, %6 : vector<8x128xf32>
    %c0_6 = arith.constant 0 : index
    %c0_7 = arith.constant 0 : index
    %c0_8 = arith.constant 0 : index
    %8 = vector.load %arg4[%c0_6, %c0_7, %c0_8] : memref<1x8x128xf32, #tpu.memory_space<vmem>>, vector<1x8x128xf32>
    %9 = vector.shape_cast %8 : vector<1x8x128xf32> to vector<8x128xf32>
    %10 = arith.addf %7, %9 : vector<8x128xf32>
    %c0_9 = arith.constant 0 : index
    %c0_10 = arith.constant 0 : index
    %c0_11 = arith.constant 0 : index
    %11 = vector.load %arg5[%c0_9, %c0_10, %c0_11] : memref<1x8x128xf32, #tpu.memory_space<vmem>>, vector<1x8x128xf32>
    %12 = vector.shape_cast %11 : vector<1x8x128xf32> to vector<8x128xf32>
    %13 = vector.shape_cast %10 : vector<8x128xf32> to vector<1x8x128xf32>
    tpu.vector_store %arg5[%c0_9, %c0_10, %c0_11], %13 {strides = array<i32>} : memref<1x8x128xf32, #tpu.memory_space<vmem>>, vector<1x8x128xf32>,
    return
  }
  func.func @transform_0(%arg0: i32) -> (i32, i32, i32) {
    %c0_i32 = arith.constant 0 : i32
    %c0_i32_0 = arith.constant 0 : i32
    %c0_i32_1 = arith.constant 0 : i32
    return %arg0, %c0_i32, %c0_i32_0 : i32, i32, i32
  }
  func.func @transform_1(%arg0: i32) -> (i32, i32) {
    %c0_i32 = arith.constant 0 : i32
    %c0_i32_0 = arith.constant 0 : i32
    %c0_i32_1 = arith.constant 0 : i32
    return %c0_i32, %c0_i32_0 : i32, i32
  }
  func.func @transform_2(%arg0: i32) -> (i32, i32) {
    %c0_i32 = arith.constant 0 : i32
    %c0_i32_0 = arith.constant 0 : i32
    %c0_i32_1 = arith.constant 0 : i32
    return %c0_i32, %c0_i32_0 : i32, i32
  }
  func.func @transform_3(%arg0: i32) -> (i32, i32, i32) {
    %c0_i32 = arith.constant 0 : i32
    %c0_i32_0 = arith.constant 0 : i32
    %c0_i32_1 = arith.constant 0 : i32
    return %arg0, %c0_i32, %c0_i32_0 : i32, i32, i32
  }
  func.func @transform_4(%arg0: i32) -> (i32, i32, i32) {
    %c0_i32 = arith.constant 0 : i32
    %c0_i32_0 = arith.constant 0 : i32
    %c0_i32_1 = arith.constant 0 : i32
    return %arg0, %c0_i32, %c0_i32_0 : i32, i32, i32
  }
}

</mosaic_0001>

<bundles_post_ra>
// kernel: tpu_custom_call.1
= control target key start
LH: loop header
LB: loop body
LE: loop exit
PB: predicated region body
PF: predicated region fallthrough
CT: control target
= control target key end

     0   :  { %s1105_s0 = inlined_call_operand.hbm [shape: f32[2,8,256], index: 0, kind: input, shape index: {}]   ;;  %s1106_s1 = inlined_call_operand.hbm [shape: bf16[256,128], index: 1, kind: input, shape index: {}]   ;;  %s1107_s2 = inlined_call_operand.vmem [shape: f32[1,128], index: 2, kind: input, shape index: {}]   ;;  %s1108_s3 = inlined_call_operand.hbm [shape: f32[2,8,128], index: 3, kind: input, shape index: {}]   ;;  %s1109_s4 = inlined_call_operand.hbm [shape: f32[2,8,128], index: 4, kind: output, shape index: {}]  }
   0x1   :  { %1110 = sst [smem:[#allocation14_spill]] %s1105_s0 }
   0x2   :  { %1111 = sst [smem:[#allocation15_spill]] %s1106_s1 }
   0x3   :  { %9 = vsyncpa [#allocation3], 0 }
   0x4   :  { %11 = vsyncpa [#allocation3 + $0x1], 0 }
   0x5   :  { %12 = vsyncpa [#allocation6], 0 }
   0x6   :  { %13 = vsyncpa [#allocation4], 0 }
   0x7   :  { %15 = vsyncpa [#allocation4 + $0x1], 0  ;;  %s908_s15 = smov 0   ;;  %s910_s16 = smov 0  }
   0x8   :  { %s912_s17 = smov 0   ;;  %s914_s18 = smov 0  }
   0x9 LB: > { %s929_s19 = sadd.s32 4294967295, %s878_s18   ;;  %s550_s20 = sadd.s32 4294967294, %s878_s18   ;;  %s878_s18 = sphi %s914_s18, %s1127_s18   ;;  %s874_s17 = sphi %s912_s17, %s1126_s17   ;;  %s870_s16 = sphi %s910_s16, %s1125_s16   ;;  %s866_s15 = sphi %s908_s15, %s1124_s15  }
   0xa   : > { %s933_s21 = sadd.s32 1, %s878_s18   ;;  %s28_s22 = sadd.s32 1, %s874_s17 }
   0xb   : > { %s25_s23 = ssub.s32 %s878_s18, %s933_s21  ;;  %p35_p0 = scmp.ne.s32.totalorder %s874_s17, %s870_s16 }
   0xc   : > { %p26_p1 = scmp.eq.s32.totalorder %s25_s23, 0  ;;  %p36_p2 = scmp.eq.s32.totalorder %s878_s18, 0 }
   0xd   : > { %p41_p3 = scmp.ne.s32.totalorder %s870_s16, %s866_s15  ;;  %p133_p4 = scmp.eq.s32.totalorder %s929_s19, 1 }
   0xe   : > { %s945_s24 = scalar_select %p26_p1, %s874_s17, %s28_s22  }
   0xf   : > { %p947_p5 = por %p36_p2, %p35_p0  ;;  %p951_p6 = por %p133_p4, %p35_p0 }
  0x10   : > { %1112 = sst [smem:[#allocation13_spill]] %s945_s24  ;;  %p139_p7 = scmp.eq.s32.totalorder %s550_s20, 1 }
  0x11   : > { %p675_p9 = scmp.lt.s32.totalorder %s878_s18, 2  ;;  %s176_s28 = sand.u32 1, %s878_s18  }
  0x12   : > { %p960_p10 = por %p139_p7, %p41_p3  ;;  %s178_s29 = sand.u32 1, %s874_s17  }
  0x13   : > { %s554_s30 = sshll.u32 %s178_s29, 4  ;;  %s632_s5 = sshll.u32 %s878_s18, 4 }
  0x14   : > { %s1116_s0 = sld [smem:[#allocation14_spill]]  ;;  %s180_s10 = scalar_lea.vmem [#allocation2], %s554_s30 }
  0x15   : > { %s189_s11 = sshll.u32 %s180_s10, 4  ;;  %p972_p11 = pnand %p675_p9, %p947_p5  ;;  %s190_s11 = int_to_ptr.vmem [resolvable:$true] %s189_s11 }
  0x16   : > { %s976_s13 = sshll.u32 %s178_s29, 3  ;;  %p42_p12 = scmp.eq.s32.totalorder %s929_s19, 0 }
  0x17   : > { %p146_p0 = scmp.lt.s32.totalorder %s878_s18, 3  ;;  %s981_s14 = scalar_lea.sflag [#allocation3], %s176_s28 }
  0x18   : > { %p718_p2 = pneg %p972_p11 }
  0x1a   : > { %s185_s8 = scalar_lea.hbm %s1116_s0, %s632_s5  ;;  %s721_s29 = scalar_lea.hbm %s1116_s0, 32 }
  0x1b   : > { %s187_s9 = sshll.u32 %s185_s8, 4  ;;  %s188_s9 = int_to_ptr.hbm [resolvable:$true] %s187_s9 }
  0x1c   : > { %s714_s20 = sshra.s32 %s188_s9, 4  ;;  %s715_s20 = int_to_ptr.hbm [resolvable:$true] %s714_s20 }
  0x1d   : > { %s716_s22 = scalar_lea.hbm %s715_s20, 16  ;;  %p722_p7 = scmp.lt.s32.totalorder %s715_s20, %s1116_s0 }
  0x1e   : > { %p717_p1 = scmp.ne.s32.totalorder %s715_s20, %s716_s22  ;;  %p723_p9 = scmp.lt.s32.totalorder %s721_s29, %s716_s22 }
  0x20   : > { %p719_p4 = pnand %p718_p2, %p717_p1  ;;  %p724_p8 = por %p723_p9, %p722_p7 }
  0x22   : > { %p720_p5 = pneg %p719_p4 }
  0x24   : > { %p725_p13 = pnand %p724_p8, %p720_p5 }
  0x26   : > { %728 = shalt.err (!%p725_p13)
}
  0x27   : > { %666 = dma.hbm_to_vmem [thread:$0]  (!%p972_p11), %s188_s9, 256, %s190_s11, %s981_s14  }
  0x28   : > { %p1002_p1 = por %p42_p12, %p41_p3  ;;  %p1119_p8 = scmp.ge.s32.totalorder %s878_s18, 1 }
  0x29   : > { %s1121_s1 = sld [smem:[#allocation15_spill]]  ;;  %s880_s9 = smov [#allocation5]  }
  0x2a   : > { %p1010_p13 = pnand %p1119_p8, %p146_p0  ;;  %s159_s11 = sshll.u32 %s880_s9, 4  ;;  %s160_s11 = int_to_ptr.vmem [resolvable:$true] %s159_s11 }
  0x2b   : > { %s558_s20 = sshll.u32 %s878_s18, 3  ;;  %s881_s22 = smov 64  }
  0x2c   : > { %p659_p4 = pneg %p1010_p13  ;;  %s882_s23 = smov 4  }
  0x2d   : > { %s204_s30 = scalar_lea.hbm %s1108_s3, %s558_s20  ;;  %s200_s5 = scalar_lea.vmem [#allocation7], %s976_s13 }
  0x2e   : > { %p660_p3 = pnand %p659_p4, %p42_p12  ;;  %s208_s7 = sshll.u32 %s200_s5, 4  ;;  %s209_s7 = int_to_ptr.vmem [resolvable:$true] %s208_s7 }
  0x2f   : > { %s157_s10 = sshll.u32 %s1121_s1, 4  ;;  %s206_s8 = sshll.u32 %s204_s30, 4  ;;  %s158_s10 = int_to_ptr.hbm [resolvable:$true] %s157_s10  ;;  %s207_s8 = int_to_ptr.hbm [resolvable:$true] %s206_s8 }
  0x30   : > { %662 = dma.hbm_to_vmem [thread:$0]  (!%p660_p3), %s158_s10, 2048, %s160_s11, [#allocation6], %s881_s22, %s881_s22, %s882_s23  }
  0x31   : > { %s774_s0 = sshra.s32 %s207_s8, 4  ;;  %s781_s10 = scalar_lea.hbm %s1108_s3, 16  ;;  %s775_s0 = int_to_ptr.hbm [resolvable:$true] %s774_s0 }
  0x32   : > { %s776_s9 = scalar_lea.hbm %s775_s0, 8  ;;  %p782_p9 = scmp.lt.s32.totalorder %s775_s0, %s1108_s3 }
  0x33   : > { %p777_p0 = scmp.ne.s32.totalorder %s775_s0, %s776_s9  ;;  %p783_p8 = scmp.lt.s32.totalorder %s781_s10, %s776_s9 }
  0x35   : > { %p779_p5 = pnand %p777_p0, %p718_p2  ;;  %p784_p4 = por %p783_p8, %p782_p9 }
  0x37   : > { %p780_p7 = pneg %p779_p5 }
  0x39   : > { %p785_p3 = pnand %p784_p4, %p780_p7 }
  0x3b   : > { %788 = shalt.err (!%p785_p3)
}
  0x3c   : > { %669 = dma.hbm_to_vmem [thread:$0]  (!%p972_p11), %s207_s8, 128, %s209_s7, %s981_s14  }
  0x3d   : > { %217 = sbr.rel (%p1010_p13) target bundleno = 241 (0xf1), region = 36  ;;  %s219_s1 = sand.u32 (!%p1010_p13), 1, %s929_s19  }
  0x3e   : > { %s1042_s24 = sand.u32 (!%p1010_p13), 1, %s870_s16   ;;  %s220_s0 = scalar_lea.sflag (!%p1010_p13), [#allocation3], %s219_s1 }
  0x3f   : > { %s560_s13 = sshll.u32 (!%p1010_p13), %s1042_s24, 4 }
  0x40   : > { %s1045_s20 = scalar_lea.vmem (!%p1010_p13), [#allocation2], %s560_s13 }
  0x42   : > { %849 = dma.done.wait (%p1002_p1), %s220_s0, 256  }
  0x43   : > { %851 = vsyncadd (%p1002_p1), %s220_s0, 4294967040 }
  0x44   : > { %853 = dma.done.wait (%p42_p12), [#allocation6], 2048  }
  0x45   : > { %855 = vsyncadd (%p42_p12), [#allocation6], 4294965248  ;;  %s562_s12 = sshll.u32 %s1042_s24, 3 }
  0x46   : > { %s1058_s14 = scalar_lea.vmem [#allocation7], %s562_s12 }
  0x47   : > { %857 = dma.done.wait (%p1002_p1), %s220_s0, 128  }
  0x48   : > { %859 = vsyncadd (%p1002_p1), %s220_s0, 4294967168  ;;  %v640_v0 = vld [vmem:[#allocation5 + $0x38] sm:$0xff]  ;;  %v639_v2 = vld [vmem:[#allocation5 + $0x30] sm:$0xff]  ;;  %s629_s28 = sshll.u32 %s929_s19, 3  ;;  %s268_s5 = scalar_lea.vmem [#allocation8], %s562_s12 }
  0x49   : > { %v648_v1 = vld [vmem:[#allocation5 + $0x78] sm:$0xff]  ;;  %405 = vmatpush.bf16.msra.mxu0 %v640_v0  ;;  %v647_v3 = vld [vmem:[#allocation5 + $0x70] sm:$0xff]  ;;  %v638_v4 = vld [vmem:[#allocation5 + $0x28] sm:$0xff]  ;;  %s445_s30 = scalar_lea.hbm %s1109_s4, %s629_s28  ;;  %s447_s7 = sshll.u32 %s268_s5, 4  ;;  %s448_s7 = int_to_ptr.vmem [resolvable:$true] %s447_s7 }
  0x4a   : > { %418 = vmatpush.bf16.msra.mxu1 %v648_v1  ;;  %v646_v5 = vld [vmem:[#allocation5 + $0x68] sm:$0xff]  ;;  %v637_v6 = vld [vmem:[#allocation5 + $0x20] sm:$0xff]  ;;  %v636_v8 = vld [vmem:[#allocation5 + $0x18] sm:$0xff]  ;;  %s449_s8 = sshll.u32 %s445_s30, 4  ;;  %s435_s19 = scalar_lea.sflag [#allocation4], %s1042_s24  ;;  %s450_s8 = int_to_ptr.hbm [resolvable:$true] %s449_s8 }
  0x4b   : > { %v645_v7 = vld [vmem:[#allocation5 + $0x60] sm:$0xff]  ;;  %v644_v9 = vld [vmem:[#allocation5 + $0x58] sm:$0xff]  ;;  %v635_v10 = vld [vmem:[#allocation5 + $0x10] sm:$0xff]  ;;  %s818_s9 = sshra.s32 %s450_s8, 4  ;;  %s824_s1 = scalar_lea.hbm %s1109_s4, 16  ;;  %s819_s9 = int_to_ptr.hbm [resolvable:$true] %s818_s9 }
  0x4c   : > { %v643_v11 = vld [vmem:[#allocation5 + $0x50] sm:$0xff]  ;;  %v634_v12 = vld [vmem:[#allocation5 + $0x8] sm:$0xff]  ;;  %v633_v14 = vld [vmem:[#allocation5] sm:$0xff]  ;;  %s820_s10 = scalar_lea.hbm %s819_s9, 8  ;;  %p825_p1 = scmp.lt.s32.totalorder %s819_s9, %s1109_s4 }
  0x4d   : > { %406 = vmatpush.bf16.msra.mxu0 %v639_v2  ;;  %v642_v13 = vld [vmem:[#allocation5 + $0x48] sm:$0xff]  ;;  %v641_v15 = vld [vmem:[#allocation5 + $0x40] sm:$0xff]  ;;  %p821_p11 = scmp.ne.s32.totalorder %s819_s9, %s820_s10  ;;  %p826_p13 = scmp.lt.s32.totalorder %s824_s1, %s820_s10 }
  0x4e   : > { %419 = vmatpush.bf16.msra.mxu1 %v647_v3  ;;  %v269_v16 = vld [vmem:[%s1045_s20] sm:$0xff]  ;;  %v270_v17 = vld [vmem:[%s1045_s20 + $0x8] sm:$0xff] }
  0x4f   : > { %v271_v18 = vpack.c.bf16 %v269_v16, %v269_v16  ;;  %v272_v19 = vpack.c.bf16 %v270_v17, %v270_v17  ;;  %v713_v20 = vld [vmem:[%s1107_s2] ss:$0 sm:$0xff]  ;;  %p822_p12 = pnand %p821_p11, %p951_p6  ;;  %p827_p0 = por %p826_p13, %p825_p1 }
  0x50   : > { %v431_v24 = vld [vmem:[%s1058_s14] sm:$0xff] }
  0x51   : > { %407 = vmatpush.bf16.msra.mxu0 %v638_v4  ;;  %p823_p2 = pneg %p822_p12 }
  0x52   : > { %420 = vmatpush.bf16.msra.mxu1 %v646_v5 }
  0x53   : > { %p828_p5 = pnand %p827_p0, %p823_p2 }
  0x55   : > { %408 = vmatpush.bf16.msra.mxu0 %v637_v6 }
  0x56   : > { %421 = vmatpush.bf16.msra.mxu1 %v645_v7 }
  0x59   : > { %409 = vmatpush.bf16.msra.mxu0 %v636_v8 }
  0x5a   : > { %422 = vmatpush.bf16.msra.mxu1 %v644_v9 }
  0x5d   : > { %410 = vmatpush.bf16.msra.mxu0 %v635_v10 }
  0x5e   : > { %423 = vmatpush.bf16.msra.mxu1 %v643_v11 }
  0x61   : > { %411 = vmatpush.bf16.msra.mxu0 %v634_v12 }
  0x62   : > { %424 = vmatpush.bf16.msra.mxu1 %v642_v13 }
  0x65   : > { %412 = vmatpush.bf16.msra.mxu0 %v633_v14 }
  0x66   : > { %425 = vmatpush.bf16.msra.mxu1 %v641_v15 }
  0x68   : > { %413 = vmatmul.bf16.vlgmr.msra.gmra.mxu0 %v271_v18 }
  0x69   : > { %426 = vmatmul.bf16.vlgmr.msra.gmra.mxu1 %v272_v19 }
  0xe5   : > { %v414_v21 = vpop.f32.mrf.mxu0 }
  0xe6   : > { %v427_v22 = vpop.f32.mrf.mxu1  ;;  %v415_v23 = vadd.f32 %v713_v20, %v414_v21 }
  0xe8   : > { %v428_v25 = vadd.f32 %v427_v22, %v415_v23 }
  0xea   : > { %v432_v26 = vadd.f32 %v431_v24, %v428_v25 }
  0xec   : > { %433 = vst [vmem:[%s268_s5] sm:$0xff] %v432_v26 }
  0xed   : > { %v416_v27 = vpop.f32.mrf.mxu0 }
  0xee   : > { %v429_v28 = vpop.f32.mrf.mxu1 }
  0xef   : > { %831 = shalt.err (!%p828_p5)
}
  0xf0   : > { %657 = dma.vmem_to_hbm [thread:$0]  (%p951_p6), %s448_s7, 128, %s450_s8, %s435_s19  }
  0xf1 PF: > { %s461_s24 = sand.u32 1, %s866_s15   ;;  %p1122_p7 = scmp.ge.s32.totalorder %s878_s18, 2 }
  0xf2   : > { %s462_s20 = scalar_lea.sflag [#allocation4], %s461_s24 }
  0xf3   : > { %p671_p9 = pnand %p1122_p7, %p960_p10 }
  0xf5   : > { %p672_p8 = pneg %p671_p9 }
  0xf7   : > { %861 = dma.done.wait (%p672_p8), %s462_s20, 128  }
  0xf8   : > { %863 = vsyncadd (%p672_p8), %s462_s20, 4294967168  ;;  %s1123_s12 = sld [smem:[#allocation13_spill]]  ;;  %p18_p4 = scmp.ge.s32.totalorder %s933_s21, 4  }
  0xf9   : > { %s1124_s15 = smov %s870_s16  ;;  %s1125_s16 = smov %s874_s17 }
  0xfa   : > { %s1127_s18 = smov %s933_s21  ;;  %20 = sbr.rel (!%p18_p4) target bundleno = 9 (0x9), region = 96 }
  0xfe   : > { %s1126_s17 = smov %s1123_s12 }
  0xff   :  { %468 = vsyncpa [#allocation3], 1 }
 0x100   :  { %470 = vsyncpa [#allocation3 + $0x1], 1 }
 0x101   :  { %471 = vsyncpa [#allocation6], 1 }
 0x102   :  { %472 = vsyncpa [#allocation4], 1 }
 0x103   :  { %474 = vsyncpa [#allocation4 + $0x1], 1 }

</bundles_post_ra>
